<compile_context>
chip_gen: v7x
topology: tpu7x:2x2x1
jax: 0.10.0
libtpu: 0.0.40
codegen_flags: <defaults>
</compile_context>

<pallas_src>
import functools

import jax
import jax.numpy as jnp
from jax import lax
from jax.experimental import pallas as pl
from jax.experimental.pallas import tpu as pltpu

MIN_NODES = 2000
LN_EPS = 1e-5


def _round_up(x, m):
    return ((x + m - 1) // m) * m


def _largest_divisor_le(n, cap):
    for d in range(min(cap, n), 0, -1):
        if n % d == 0:
            return d
    return 1


# ---------------------------------------------------------------------------
# Kernel 1: segment-sum   agg[n] = sum_{e : rcv[e] == n} edge_attr[e]
# Computed once (edge_attr / edge_index never change across steps).
# One-hot (bf16, exact 0/1) is built per (n_tile, e_tile) tile and fed to the MXU;
# the output block is revisited across the E (reduction) axis as an f32 accumulator.
# ---------------------------------------------------------------------------
def _segment_sum_kernel(rcv_ref, e_ref, out_ref, *, n_tile):
    ei = pl.program_id(1)

    @pl.when(ei == 0)
    def _():
        out_ref[...] = jnp.zeros_like(out_ref)

    base = pl.program_id(0) * n_tile
    e_tile = e_ref.shape[0]
    node_ids = lax.broadcasted_iota(jnp.int32, (n_tile, e_tile), 0)
    # Shift the tile base onto the (1, e_tile) receiver row (cheap) instead of the
    # (n_tile, e_tile) iota; the broadcast against the iota is sublane-only.
    onehot = (node_ids == (rcv_ref[...] - base)).astype(jnp.bfloat16)
    out_ref[...] += jnp.dot(onehot, e_ref[...], preferred_element_type=jnp.float32)


def segment_sum(edge_attr_bf16, rcv, n_pad, *, n_tile=256, e_tile=1024):
    """agg[:n_pad] = unsorted_segment_sum(edge_attr, rcv, n_pad) via one-hot matmul."""
    E, F = edge_attr_bf16.shape
    n_tile = min(n_tile, n_pad)
    assert n_pad % n_tile == 0
    e_tile = min(e_tile, _round_up(E, 128))
    E_pad = _round_up(E, e_tile)

    e_padded = jnp.zeros((E_pad, F), edge_attr_bf16.dtype).at[:E].set(edge_attr_bf16)
    # Pad receivers with an out-of-range id (n_pad) -> padded edges match no node.
    rcv_padded = jnp.full((1, E_pad), n_pad, jnp.int32).at[0, :E].set(rcv.astype(jnp.int32))

    grid = (n_pad // n_tile, E_pad // e_tile)
    return pl.pallas_call(
        functools.partial(_segment_sum_kernel, n_tile=n_tile),
        out_shape=jax.ShapeDtypeStruct((n_pad, F), jnp.float32),
        grid=grid,
        in_specs=[
            pl.BlockSpec((1, e_tile), lambda ni, ei: (0, ei)),
            pl.BlockSpec((e_tile, F), lambda ni, ei: (ei, 0)),
        ],
        out_specs=pl.BlockSpec((n_tile, F), lambda ni, ei: (ni, 0)),
        compiler_params=pltpu.CompilerParams(
            dimension_semantics=("parallel", "arbitrary")),
    )(rcv_padded, e_padded)


# ---------------------------------------------------------------------------
# Kernel 2: all message-passing steps, fused.
# Grid = (node_tiles [parallel], step_blocks [arbitrary]).  A (n_tile, 2F) f32 VMEM
# scratch holds [x | agg]; agg half written once per node tile, x half refreshed each
# step.  Per step (K=256 fused dot):
#   h = relu([x|agg] @ W1 + b1) ;  y = h @ W2 + b2
#   x <- LayerNorm(y)*gamma + beta + x          (residual)
# k steps run per grid iteration via an unrolled fori_loop over the blocked weights.
# ---------------------------------------------------------------------------
def _mp_steps_kernel(xa0_ref, w1_ref, b1_ref, w2_ref, b2_ref, g_ref, beta_ref,
                     out_ref, xa_ref, *, k, feat):
    sb = pl.program_id(1)

    @pl.when(sb == 0)
    def _():
        xa_ref[...] = xa0_ref[...]          # [x0 | agg] for this node tile

    inv_f = 1.0 / float(feat)

    def step(j, carry):
        xa = xa_ref[...]                                        # f32 (n_tile, 2F)
        h = jnp.dot(xa.astype(jnp.bfloat16), w1_ref[j],
                    preferred_element_type=jnp.float32)         # K = 2F fused dot
        h = jnp.maximum(h + b1_ref[j], 0.0)
        y = jnp.dot(h.astype(jnp.bfloat16), w2_ref[j],
                    preferred_element_type=jnp.float32) + b2_ref[j]
        # one-pass LayerNorm stats: var = E[y^2] - mu^2 ; rsqrt stays on the EUP
        s1 = jnp.sum(y, axis=-1, keepdims=True)
        s2 = jnp.sum(y * y, axis=-1, keepdims=True)
        mu = s1 * inv_f
        var = s2 * inv_f - mu * mu
        yn = (y - mu) * lax.rsqrt(var + LN_EPS)
        xa_ref[:, :feat] = yn * g_ref[j] + beta_ref[j] + xa[:, :feat]   # residual
        return carry

    lax.fori_loop(0, k, step, 0, unroll=True)

    @pl.when(sb == pl.num_programs(1) - 1)
    def _():
        out_ref[...] = xa_ref[:, :feat]


def message_passing_steps(xa0, stacked, *, n_tile):
    N_pad, F2 = xa0.shape
    F = F2 // 2
    steps, _, H = stacked["w1"].shape
    assert N_pad % n_tile == 0

    k = _largest_divisor_le(steps, 4)          # steps per grid iteration
    sb_count = steps // k
    grid = (N_pad // n_tile, sb_count)

    return pl.pallas_call(
        functools.partial(_mp_steps_kernel, k=k, feat=F),
        out_shape=jax.ShapeDtypeStruct((N_pad, F), jnp.float32),
        grid=grid,
        in_specs=[
            pl.BlockSpec((n_tile, F2), lambda ni, sb: (ni, 0)),     # [x0 | agg]
            pl.BlockSpec((k, F2, H), lambda ni, sb: (sb, 0, 0)),    # W1 (bf16, unsplit)
            pl.BlockSpec((k, 1, H), lambda ni, sb: (sb, 0, 0)),     # b1
            pl.BlockSpec((k, H, F), lambda ni, sb: (sb, 0, 0)),     # W2 (bf16)
            pl.BlockSpec((k, 1, F), lambda ni, sb: (sb, 0, 0)),     # b2
            pl.BlockSpec((k, 1, F), lambda ni, sb: (sb, 0, 0)),     # gamma
            pl.BlockSpec((k, 1, F), lambda ni, sb: (sb, 0, 0)),     # beta
        ],
        out_specs=pl.BlockSpec((n_tile, F), lambda ni, sb: (ni, 0)),
        scratch_shapes=[pltpu.VMEM((n_tile, F2), jnp.float32)],     # resident [x | agg]
        compiler_params=pltpu.CompilerParams(
            dimension_semantics=("parallel", "arbitrary")),
    )(xa0, stacked["w1"], stacked["b1"], stacked["w2"], stacked["b2"],
      stacked["gamma"], stacked["beta"])


# ------------------------------ Processor forward ----------------------------
def processor_forward(x, pos, edge_attr, edge_index, block_params, *, n_tile=256):
    """Pallas version of Processor.forward for the small-graph (N <= min_nodes) path."""
    if x.shape[0] > MIN_NODES:
        # TODO(synk): coarsening path uses getcorsenode/graph_connectivity, which are
        # not defined in the provided source; only the N <= min_nodes path is implemented.
        raise NotImplementedError("coarsening path not defined in reference source")

    N, F = x.shape
    n_tile = min(n_tile, _round_up(N, 8))
    N_pad = _round_up(N, n_tile)

    # NOTE: the edge-MLP output is computed then discarded by the PyTorch forward
    # (returned Data keeps the old edge_attr), so that dead compute is dropped here.
    # Node-MLP weights are stacked across steps; matmul operands stored in bf16
    # (f32 accumulation in-kernel), biases / LayerNorm affine stay f32.
    stacked = {
        "w1":    jnp.stack([p["node"]["w1"] for p in block_params]).astype(jnp.bfloat16),
        "b1":    jnp.stack([p["node"]["b1"].reshape(1, -1) for p in block_params]),
        "w2":    jnp.stack([p["node"]["w2"] for p in block_params]).astype(jnp.bfloat16),
        "b2":    jnp.stack([p["node"]["b2"].reshape(1, -1) for p in block_params]),
        "gamma": jnp.stack([p["node"]["gamma"].reshape(1, -1) for p in block_params]),
        "beta":  jnp.stack([p["node"]["beta"].reshape(1, -1) for p in block_params]),
    }

    rcv = edge_index[1]
    # edge_attr / edge_index are invariant across GraphNetBlock steps -> one segment-sum.
    agg = segment_sum(edge_attr.astype(jnp.bfloat16), rcv, N_pad, n_tile=n_tile)

    x_pad = jnp.zeros((N_pad, F), jnp.float32).at[:N].set(x.astype(jnp.float32))
    xa0 = jnp.concatenate([x_pad, agg], axis=-1)                  # (N_pad, 2F)

    new_x = message_passing_steps(xa0, stacked, n_tile=n_tile)[:N]

    xs = [(new_x, pos, edge_attr, edge_index)]    # x list = [last graph]
    poss = []                                     # pos list empty on small-node path
    return xs, poss


# ------------------------- deterministic parameters --------------------------
def make_mlp_params(key, in_dim, hidden, out_dim):
    k1, k2, k3, k4, k5, k6 = jax.random.split(key, 6)
    return {
        "w1": jax.random.normal(k1, (in_dim, hidden), jnp.float32) / jnp.sqrt(in_dim),
        "b1": 0.1 * jax.random.normal(k3, (hidden,), jnp.float32),
        "w2": jax.random.normal(k2, (hidden, out_dim), jnp.float32) / jnp.sqrt(hidden),
        "b2": 0.1 * jax.random.normal(k4, (out_dim,), jnp.float32),
        "gamma": 1.0 + 0.1 * jax.random.normal(k5, (out_dim,), jnp.float32),
        "beta": 0.1 * jax.random.normal(k6, (out_dim,), jnp.float32),
    }


def make_processor_params(key, latent, hidden, steps):
    blocks = []
    for i in range(steps):
        ke, kn = jax.random.split(jax.random.fold_in(key, i), 2)
        blocks.append({
            "edge": make_mlp_params(ke, 3 * latent, hidden, latent),   # unused (dead in fwd)
            "node": make_mlp_params(kn, 2 * latent, hidden, latent),
        })
    return blocks


# ------------------------------ pure-JAX reference ---------------------------
# Mirrors the kernel numerics: bf16 MXU operands, f32 accumulation (so the self-test
# tolerance can stay tight).
def _ref_mlp(f, p):
    h = jnp.dot(f.astype(jnp.bfloat16), p["w1"].astype(jnp.bfloat16),
                preferred_element_type=jnp.float32) + p["b1"]
    h = jnp.maximum(h, 0.0)
    y = jnp.dot(h.astype(jnp.bfloat16), p["w2"].astype(jnp.bfloat16),
                preferred_element_type=jnp.float32) + p["b2"]
    mu = y.mean(-1, keepdims=True)
    var = ((y - mu) ** 2).mean(-1, keepdims=True)
    return (y - mu) / jnp.sqrt(var + LN_EPS) * p["gamma"] + p["beta"]


def _ref_block(x, e, rcv, params):
    e_q = e.astype(jnp.bfloat16).astype(jnp.float32)
    agg = jax.ops.segment_sum(e_q, rcv, num_segments=x.shape[0])
    return _ref_mlp(jnp.concatenate([x, agg], -1), params["node"]) + x


# ----------------------------------- main ------------------------------------
if __name__ == "__main__":
    # lane-dense latent/hidden = 128 (module has LayerNorm(128)); small N, E
    N, E, F, H, P, STEPS = 16, 64, 128, 128, 3, 2

    key = jax.random.PRNGKey(0)
    kx, ke, ki, kp, kw = jax.random.split(key, 5)
    x = jax.random.normal(kx, (N, F), jnp.float32)
    edge_attr = jax.random.normal(ke, (E, F), jnp.float32)
    edge_index = jax.random.randint(ki, (2, E), 0, N, jnp.int32)
    pos = jax.random.normal(kp, (N, P), jnp.float32)

    params = make_processor_params(kw, F, H, STEPS)

    fwd = jax.jit(processor_forward)
    xs, poss = fwd(x, pos, edge_attr, edge_index, params)
    final_x, final_pos, final_e, final_ei = xs[0]
    jax.block_until_ready(final_x)

    # correctness check against pure-JAX reference of the node path
    ref = x
    for p in params:
        ref = _ref_block(ref, edge_attr, edge_index[1], p)
    assert jnp.allclose(final_x, ref, atol=2e-3, rtol=2e-3), "mismatch vs reference"
    assert len(poss) == 0
    assert jnp.array_equal(final_e, edge_attr) and jnp.array_equal(final_ei, edge_index)
    assert jnp.array_equal(final_pos, pos)

    print("KERNEL_OK")
</pallas_src>

<mosaic_0001>
module attributes {stable_mosaic.version = 11 : i64} {
  func.func @_mp_steps_kernel(%arg0: i32, %arg1: i32, %arg2: memref<16x256xf32, #tpu.memory_space<vmem>>, %arg3: memref<2x256x128xbf16, #tpu.memory_space<vmem>>, %arg4: memref<2x1x128xf32, #tpu.memory_space<vmem>>, %arg5: memref<2x128x128xbf16, #tpu.memory_space<vmem>>, %arg6: memref<2x1x128xf32, #tpu.memory_space<vmem>>, %arg7: memref<2x1x128xf32, #tpu.memory_space<vmem>>, %arg8: memref<2x1x128xf32, #tpu.memory_space<vmem>>, %arg9: memref<16x128xf32, #tpu.memory_space<vmem>>, %arg10: memref<16x256xf32, #tpu.memory_space<vmem>>) attributes {dimension_semantics = [#tpu.dimension_semantics<parallel>, #tpu.dimension_semantics<arbitrary>], iteration_bounds = array<i64: 1, 1>, scalar_prefetch = 0 : i64, scratch_operands = 1 : i64, tpu.core_type = #tpu.core_type<tc>, window_params = [{transform_indices = @transform_0, window_bounds = array<i64: 16, 256>}, {transform_indices = @transform_1, window_bounds = array<i64: 2, 256, 128>}, {transform_indices = @transform_2, window_bounds = array<i64: 2, 1, 128>}, {transform_indices = @transform_3, window_bounds = array<i64: 2, 128, 128>}, {transform_indices = @transform_4, window_bounds = array<i64: 2, 1, 128>}, {transform_indices = @transform_5, window_bounds = array<i64: 2, 1, 128>}, {transform_indices = @transform_6, window_bounds = array<i64: 2, 1, 128>}, {transform_indices = @transform_7, window_bounds = array<i64: 16, 128>}]} {
    %c0_i32 = arith.constant 0 : i32
    %0 = arith.cmpi eq, %arg1, %c0_i32 : i32
    %1 = arith.extui %0 : i1 to i32
    %c0_i32_0 = arith.constant 0 : i32
    %2 = arith.cmpi ne, %1, %c0_i32_0 : i32
    scf.if %2 {
      %c0_50 = arith.constant 0 : index
      %c0_51 = arith.constant 0 : index
      %114 = vector.load %arg2[%c0_50, %c0_51] : memref<16x256xf32, #tpu.memory_space<vmem>>, vector<16x256xf32>
      %c0_52 = arith.constant 0 : index
      %c0_53 = arith.constant 0 : index
      %115 = vector.load %arg10[%c0_52, %c0_53] : memref<16x256xf32, #tpu.memory_space<vmem>>, vector<16x256xf32>
      tpu.vector_store %arg10[%c0_52, %c0_53], %114 {strides = array<i32>} : memref<16x256xf32, #tpu.memory_space<vmem>>, vector<16x256xf32>,
    } else {
    }
    %c0_i32_1 = arith.constant 0 : i32
    %c0 = arith.constant 0 : index
    %c0_2 = arith.constant 0 : index
    %3 = vector.load %arg10[%c0, %c0_2] : memref<16x256xf32, #tpu.memory_space<vmem>>, vector<16x256xf32>
    %4 = arith.truncf %3 : vector<16x256xf32> to vector<16x256xbf16>
    %5 = arith.index_cast %c0_i32_1 : i32 to index
    %c0_3 = arith.constant 0 : index
    %c0_4 = arith.constant 0 : index
    %6 = vector.load %arg3[%5, %c0_3, %c0_4] : memref<2x256x128xbf16, #tpu.memory_space<vmem>>, vector<1x256x128xbf16>
    %7 = vector.shape_cast %6 : vector<1x256x128xbf16> to vector<256x128xbf16>
    %cst = arith.constant dense<0.000000e+00> : vector<16x128xf32>
    %8 = tpu.matmul %4, %7, %cst {dimension_numbers = #tpu.dot_dimension_numbers<[1], [0], [0], [1], [0, 0, 1, 1], [], []>} : vector<16x256xbf16>, vector<256x128xbf16>, vector<16x128xf32> -> vector<16x128xf32>
    %9 = arith.index_cast %c0_i32_1 : i32 to index
    %c0_5 = arith.constant 0 : index
    %c0_6 = arith.constant 0 : index
    %10 = vector.load %arg4[%9, %c0_5, %c0_6] : memref<2x1x128xf32, #tpu.memory_space<vmem>>, vector<1x1x128xf32>
    %11 = vector.shape_cast %10 : vector<1x1x128xf32> to vector<1x128xf32>
    %12 = vector.broadcast %11 : vector<1x128xf32> to vector<16x128xf32>
    %13 = arith.addf %8, %12 : vector<16x128xf32>
    %cst_7 = arith.constant 0.000000e+00 : f32
    %14 = vector.broadcast %cst_7 : f32 to vector<16x128xf32>
    %15 = arith.maximumf %13, %14 : vector<16x128xf32>
    %16 = arith.truncf %15 : vector<16x128xf32> to vector<16x128xbf16>
    %17 = arith.index_cast %c0_i32_1 : i32 to index
    %c0_8 = arith.constant 0 : index
    %c0_9 = arith.constant 0 : index
    %18 = vector.load %arg5[%17, %c0_8, %c0_9] : memref<2x128x128xbf16, #tpu.memory_space<vmem>>, vector<1x128x128xbf16>
    %19 = vector.shape_cast %18 : vector<1x128x128xbf16> to vector<128x128xbf16>
    %cst_10 = arith.constant dense<0.000000e+00> : vector<16x128xf32>
    %20 = tpu.matmul %16, %19, %cst_10 {dimension_numbers = #tpu.dot_dimension_numbers<[1], [0], [0], [1], [0, 0, 1, 1], [], []>} : vector<16x128xbf16>, vector<128x128xbf16>, vector<16x128xf32> -> vector<16x128xf32>
    %21 = arith.index_cast %c0_i32_1 : i32 to index
    %c0_11 = arith.constant 0 : index
    %c0_12 = arith.constant 0 : index
    %22 = vector.load %arg6[%21, %c0_11, %c0_12] : memref<2x1x128xf32, #tpu.memory_space<vmem>>, vector<1x1x128xf32>
    %23 = vector.shape_cast %22 : vector<1x1x128xf32> to vector<1x128xf32>
    %24 = vector.broadcast %23 : vector<1x128xf32> to vector<16x128xf32>
    %25 = arith.addf %20, %24 : vector<16x128xf32>
    %cst_13 = arith.constant dense<0.000000e+00> : vector<16xf32>
    %26 = vector.multi_reduction <add>, %25, %cst_13 [1] : vector<16x128xf32> to vector<16xf32>
    %27 = vector.shape_cast %26 : vector<16xf32> to vector<16x1xf32>
    %28 = arith.mulf %25, %25 : vector<16x128xf32>
    %cst_14 = arith.constant dense<0.000000e+00> : vector<16xf32>
    %29 = vector.multi_reduction <add>, %28, %cst_14 [1] : vector<16x128xf32> to vector<16xf32>
    %30 = vector.shape_cast %29 : vector<16xf32> to vector<16x1xf32>
    %cst_15 = arith.constant 7.812500e-03 : f32
    %31 = vector.broadcast %cst_15 : f32 to vector<16x1xf32>
    %32 = arith.mulf %27, %31 : vector<16x1xf32>
    %cst_16 = arith.constant 7.812500e-03 : f32
    %33 = vector.broadcast %cst_16 : f32 to vector<16x1xf32>
    %34 = arith.mulf %30, %33 : vector<16x1xf32>
    %35 = arith.mulf %32, %32 : vector<16x1xf32>
    %36 = arith.subf %34, %35 : vector<16x1xf32>
    %37 = vector.broadcast %32 : vector<16x1xf32> to vector<16x128xf32>
    %38 = arith.subf %25, %37 : vector<16x128xf32>
    %cst_17 = arith.constant 9.99999974E-6 : f32
    %39 = vector.broadcast %cst_17 : f32 to vector<16x1xf32>
    %40 = arith.addf %36, %39 : vector<16x1xf32>
    %41 = math.rsqrt %40 : vector<16x1xf32>
    %42 = vector.broadcast %41 : vector<16x1xf32> to vector<16x128xf32>
    %43 = arith.mulf %38, %42 : vector<16x128xf32>
    %44 = arith.index_cast %c0_i32_1 : i32 to index
    %c0_18 = arith.constant 0 : index
    %c0_19 = arith.constant 0 : index
    %45 = vector.load %arg7[%44, %c0_18, %c0_19] : memref<2x1x128xf32, #tpu.memory_space<vmem>>, vector<1x1x128xf32>
    %46 = vector.shape_cast %45 : vector<1x1x128xf32> to vector<1x128xf32>
    %47 = vector.broadcast %46 : vector<1x128xf32> to vector<16x128xf32>
    %48 = arith.mulf %43, %47 : vector<16x128xf32>
    %49 = arith.index_cast %c0_i32_1 : i32 to index
    %c0_20 = arith.constant 0 : index
    %c0_21 = arith.constant 0 : index
    %50 = vector.load %arg8[%49, %c0_20, %c0_21] : memref<2x1x128xf32, #tpu.memory_space<vmem>>, vector<1x1x128xf32>
    %51 = vector.shape_cast %50 : vector<1x1x128xf32> to vector<1x128xf32>
    %52 = vector.broadcast %51 : vector<1x128xf32> to vector<16x128xf32>
    %53 = arith.addf %48, %52 : vector<16x128xf32>
    %54 = vector.extract_strided_slice %3 {offsets = [0, 0], sizes = [16, 128], strides = [1, 1]} : vector<16x256xf32> to vector<16x128xf32>
    %55 = arith.addf %53, %54 : vector<16x128xf32>
    %c0_22 = arith.constant 0 : index
    %c0_23 = arith.constant 0 : index
    %56 = vector.load %arg10[%c0_22, %c0_23] : memref<16x256xf32, #tpu.memory_space<vmem>>, vector<16x128xf32>
    tpu.vector_store %arg10[%c0_22, %c0_23], %55 {strides = array<i32>} : memref<16x256xf32, #tpu.memory_space<vmem>>, vector<16x128xf32>,
    %c1_i32 = arith.constant 1 : i32
    %c0_24 = arith.constant 0 : index
    %c0_25 = arith.constant 0 : index
    %57 = vector.load %arg10[%c0_24, %c0_25] : memref<16x256xf32, #tpu.memory_space<vmem>>, vector<16x256xf32>
    %58 = arith.truncf %57 : vector<16x256xf32> to vector<16x256xbf16>
    %59 = arith.index_cast %c1_i32 : i32 to index
    %c0_26 = arith.constant 0 : index
    %c0_27 = arith.constant 0 : index
    %60 = vector.load %arg3[%59, %c0_26, %c0_27] : memref<2x256x128xbf16, #tpu.memory_space<vmem>>, vector<1x256x128xbf16>
    %61 = vector.shape_cast %60 : vector<1x256x128xbf16> to vector<256x128xbf16>
    %cst_28 = arith.constant dense<0.000000e+00> : vector<16x128xf32>
    %62 = tpu.matmul %58, %61, %cst_28 {dimension_numbers = #tpu.dot_dimension_numbers<[1], [0], [0], [1], [0, 0, 1, 1], [], []>} : vector<16x256xbf16>, vector<256x128xbf16>, vector<16x128xf32> -> vector<16x128xf32>
    %63 = arith.index_cast %c1_i32 : i32 to index
    %c0_29 = arith.constant 0 : index
    %c0_30 = arith.constant 0 : index
    %64 = vector.load %arg4[%63, %c0_29, %c0_30] : memref<2x1x128xf32, #tpu.memory_space<vmem>>, vector<1x1x128xf32>
    %65 = vector.shape_cast %64 : vector<1x1x128xf32> to vector<1x128xf32>
    %66 = vector.broadcast %65 : vector<1x128xf32> to vector<16x128xf32>
    %67 = arith.addf %62, %66 : vector<16x128xf32>
    %cst_31 = arith.constant 0.000000e+00 : f32
    %68 = vector.broadcast %cst_31 : f32 to vector<16x128xf32>
    %69 = arith.maximumf %67, %68 : vector<16x128xf32>
    %70 = arith.truncf %69 : vector<16x128xf32> to vector<16x128xbf16>
    %71 = arith.index_cast %c1_i32 : i32 to index
    %c0_32 = arith.constant 0 : index
    %c0_33 = arith.constant 0 : index
    %72 = vector.load %arg5[%71, %c0_32, %c0_33] : memref<2x128x128xbf16, #tpu.memory_space<vmem>>, vector<1x128x128xbf16>
    %73 = vector.shape_cast %72 : vector<1x128x128xbf16> to vector<128x128xbf16>
    %cst_34 = arith.constant dense<0.000000e+00> : vector<16x128xf32>
    %74 = tpu.matmul %70, %73, %cst_34 {dimension_numbers = #tpu.dot_dimension_numbers<[1], [0], [0], [1], [0, 0, 1, 1], [], []>} : vector<16x128xbf16>, vector<128x128xbf16>, vector<16x128xf32> -> vector<16x128xf32>
    %75 = arith.index_cast %c1_i32 : i32 to index
    %c0_35 = arith.constant 0 : index
    %c0_36 = arith.constant 0 : index
    %76 = vector.load %arg6[%75, %c0_35, %c0_36] : memref<2x1x128xf32, #tpu.memory_space<vmem>>, vector<1x1x128xf32>
    %77 = vector.shape_cast %76 : vector<1x1x128xf32> to vector<1x128xf32>
    %78 = vector.broadcast %77 : vector<1x128xf32> to vector<16x128xf32>
    %79 = arith.addf %74, %78 : vector<16x128xf32>
    %cst_37 = arith.constant dense<0.000000e+00> : vector<16xf32>
    %80 = vector.multi_reduction <add>, %79, %cst_37 [1] : vector<16x128xf32> to vector<16xf32>
    %81 = vector.shape_cast %80 : vector<16xf32> to vector<16x1xf32>
    %82 = arith.mulf %79, %79 : vector<16x128xf32>
    %cst_38 = arith.constant dense<0.000000e+00> : vector<16xf32>
    %83 = vector.multi_reduction <add>, %82, %cst_38 [1] : vector<16x128xf32> to vector<16xf32>
    %84 = vector.shape_cast %83 : vector<16xf32> to vector<16x1xf32>
    %cst_39 = arith.constant 7.812500e-03 : f32
    %85 = vector.broadcast %cst_39 : f32 to vector<16x1xf32>
    %86 = arith.mulf %81, %85 : vector<16x1xf32>
    %cst_40 = arith.constant 7.812500e-03 : f32
    %87 = vector.broadcast %cst_40 : f32 to vector<16x1xf32>
    %88 = arith.mulf %84, %87 : vector<16x1xf32>
    %89 = arith.mulf %86, %86 : vector<16x1xf32>
    %90 = arith.subf %88, %89 : vector<16x1xf32>
    %91 = vector.broadcast %86 : vector<16x1xf32> to vector<16x128xf32>
    %92 = arith.subf %79, %91 : vector<16x128xf32>
    %cst_41 = arith.constant 9.99999974E-6 : f32
    %93 = vector.broadcast %cst_41 : f32 to vector<16x1xf32>
    %94 = arith.addf %90, %93 : vector<16x1xf32>
    %95 = math.rsqrt %94 : vector<16x1xf32>
    %96 = vector.broadcast %95 : vector<16x1xf32> to vector<16x128xf32>
    %97 = arith.mulf %92, %96 : vector<16x128xf32>
    %98 = arith.index_cast %c1_i32 : i32 to index
    %c0_42 = arith.constant 0 : index
    %c0_43 = arith.constant 0 : index
    %99 = vector.load %arg7[%98, %c0_42, %c0_43] : memref<2x1x128xf32, #tpu.memory_space<vmem>>, vector<1x1x128xf32>
    %100 = vector.shape_cast %99 : vector<1x1x128xf32> to vector<1x128xf32>
    %101 = vector.broadcast %100 : vector<1x128xf32> to vector<16x128xf32>
    %102 = arith.mulf %97, %101 : vector<16x128xf32>
    %103 = arith.index_cast %c1_i32 : i32 to index
    %c0_44 = arith.constant 0 : index
    %c0_45 = arith.constant 0 : index
    %104 = vector.load %arg8[%103, %c0_44, %c0_45] : memref<2x1x128xf32, #tpu.memory_space<vmem>>, vector<1x1x128xf32>
    %105 = vector.shape_cast %104 : vector<1x1x128xf32> to vector<1x128xf32>
    %106 = vector.broadcast %105 : vector<1x128xf32> to vector<16x128xf32>
    %107 = arith.addf %102, %106 : vector<16x128xf32>
    %108 = vector.extract_strided_slice %57 {offsets = [0, 0], sizes = [16, 128], strides = [1, 1]} : vector<16x256xf32> to vector<16x128xf32>
    %109 = arith.addf %107, %108 : vector<16x128xf32>
    %c0_46 = arith.constant 0 : index
    %c0_47 = arith.constant 0 : index
    %110 = vector.load %arg10[%c0_46, %c0_47] : memref<16x256xf32, #tpu.memory_space<vmem>>, vector<16x128xf32>
    tpu.vector_store %arg10[%c0_46, %c0_47], %109 {strides = array<i32>} : memref<16x256xf32, #tpu.memory_space<vmem>>, vector<16x128xf32>,
    %c2_i32 = arith.constant 2 : i32
    %c0_i32_48 = arith.constant 0 : i32
    %111 = arith.cmpi eq, %arg1, %c0_i32_48 : i32
    %112 = arith.extui %111 : i1 to i32
    %c0_i32_49 = arith.constant 0 : i32
    %113 = arith.cmpi ne, %112, %c0_i32_49 : i32
    scf.if %113 {
      %c0_50 = arith.constant 0 : index
      %c0_51 = arith.constant 0 : index
      %114 = vector.load %arg10[%c0_50, %c0_51] : memref<16x256xf32, #tpu.memory_space<vmem>>, vector<16x128xf32>
      %c0_52 = arith.constant 0 : index
      %c0_53 = arith.constant 0 : index
      %115 = vector.load %arg9[%c0_52, %c0_53] : memref<16x128xf32, #tpu.memory_space<vmem>>, vector<16x128xf32>
      tpu.vector_store %arg9[%c0_52, %c0_53], %114 {strides = array<i32>} : memref<16x128xf32, #tpu.memory_space<vmem>>, vector<16x128xf32>,
    } else {
    }
    return
  }
  func.func @transform_0(%arg0: i32, %arg1: i32) -> (i32, i32) {
    %c0_i32 = arith.constant 0 : i32
    %c0_i32_0 = arith.constant 0 : i32
    return %arg0, %c0_i32 : i32, i32
  }
  func.func @transform_1(%arg0: i32, %arg1: i32) -> (i32, i32, i32) {
    %c0_i32 = arith.constant 0 : i32
    %c0_i32_0 = arith.constant 0 : i32
    %c0_i32_1 = arith.constant 0 : i32
    return %arg1, %c0_i32, %c0_i32_0 : i32, i32, i32
  }
  func.func @transform_2(%arg0: i32, %arg1: i32) -> (i32, i32, i32) {
    %c0_i32 = arith.constant 0 : i32
    %c0_i32_0 = arith.constant 0 : i32
    %c0_i32_1 = arith.constant 0 : i32
    return %arg1, %c0_i32, %c0_i32_0 : i32, i32, i32
  }
  func.func @transform_3(%arg0: i32, %arg1: i32) -> (i32, i32, i32) {
    %c0_i32 = arith.constant 0 : i32
    %c0_i32_0 = arith.constant 0 : i32
    %c0_i32_1 = arith.constant 0 : i32
    return %arg1, %c0_i32, %c0_i32_0 : i32, i32, i32
  }
  func.func @transform_4(%arg0: i32, %arg1: i32) -> (i32, i32, i32) {
    %c0_i32 = arith.constant 0 : i32
    %c0_i32_0 = arith.constant 0 : i32
    %c0_i32_1 = arith.constant 0 : i32
    return %arg1, %c0_i32, %c0_i32_0 : i32, i32, i32
  }
  func.func @transform_5(%arg0: i32, %arg1: i32) -> (i32, i32, i32) {
    %c0_i32 = arith.constant 0 : i32
    %c0_i32_0 = arith.constant 0 : i32
    %c0_i32_1 = arith.constant 0 : i32
    return %arg1, %c0_i32, %c0_i32_0 : i32, i32, i32
  }
  func.func @transform_6(%arg0: i32, %arg1: i32) -> (i32, i32, i32) {
    %c0_i32 = arith.constant 0 : i32
    %c0_i32_0 = arith.constant 0 : i32
    %c0_i32_1 = arith.constant 0 : i32
    return %arg1, %c0_i32, %c0_i32_0 : i32, i32, i32
  }
  func.func @transform_7(%arg0: i32, %arg1: i32) -> (i32, i32) {
    %c0_i32 = arith.constant 0 : i32
    %c0_i32_0 = arith.constant 0 : i32
    return %arg0, %c0_i32 : i32, i32
  }
}

module attributes {stable_mosaic.version = 11 : i64} {
  func.func @_segment_sum_kernel(%arg0: i32, %arg1: i32, %arg2: memref<1x128xi32, #tpu.memory_space<vmem>>, %arg3: memref<128x128xbf16, #tpu.memory_space<vmem>>, %arg4: memref<16x128xf32, #tpu.memory_space<vmem>>) attributes {dimension_semantics = [#tpu.dimension_semantics<parallel>, #tpu.dimension_semantics<arbitrary>], iteration_bounds = array<i64: 1, 1>, scalar_prefetch = 0 : i64, scratch_operands = 0 : i64, tpu.core_type = #tpu.core_type<tc>, window_params = [{transform_indices = @transform_0, window_bounds = array<i64: 1, 128>}, {transform_indices = @transform_1, window_bounds = array<i64: 128, 128>}, {transform_indices = @transform_2, window_bounds = array<i64: 16, 128>}]} {
    %c0_i32 = arith.constant 0 : i32
    %0 = arith.cmpi eq, %arg1, %c0_i32 : i32
    %1 = arith.extui %0 : i1 to i32
    %c0_i32_0 = arith.constant 0 : i32
    %2 = arith.cmpi ne, %1, %c0_i32_0 : i32
    scf.if %2 {
      %cst_8 = arith.constant 0.000000e+00 : f32
      %18 = vector.broadcast %cst_8 : f32 to vector<16x128xf32>
      %c0_9 = arith.constant 0 : index
      %c0_10 = arith.constant 0 : index
      %19 = vector.load %arg4[%c0_9, %c0_10] : memref<16x128xf32, #tpu.memory_space<vmem>>, vector<16x128xf32>
      tpu.vector_store %arg4[%c0_9, %c0_10], %18 {strides = array<i32>} : memref<16x128xf32, #tpu.memory_space<vmem>>, vector<16x128xf32>,
    } else {
    }
    %c16_i32 = arith.constant 16 : i32
    %3 = arith.muli %arg0, %c16_i32 : i32
    %4 = tpu.iota {dimensions = array<i32: 0>} : vector<16x128xi32>
    %c0 = arith.constant 0 : index
    %c0_1 = arith.constant 0 : index
    %5 = vector.load %arg2[%c0, %c0_1] : memref<1x128xi32, #tpu.memory_space<vmem>>, vector<1x128xi32>
    %6 = vector.broadcast %3 : i32 to vector<1x128xi32>
    %7 = arith.subi %5, %6 : vector<1x128xi32>
    %8 = vector.broadcast %7 : vector<1x128xi32> to vector<16x128xi32>
    %9 = arith.cmpi eq, %4, %8 : vector<16x128xi32>
    %10 = arith.extui %9 : vector<16x128xi1> to vector<16x128xi32>
    %11 = arith.sitofp %10 : vector<16x128xi32> to vector<16x128xf32>
    %12 = arith.truncf %11 : vector<16x128xf32> to vector<16x128xbf16>
    %c0_2 = arith.constant 0 : index
    %c0_3 = arith.constant 0 : index
    %13 = vector.load %arg4[%c0_2, %c0_3] : memref<16x128xf32, #tpu.memory_space<vmem>>, vector<16x128xf32>
    %c0_4 = arith.constant 0 : index
    %c0_5 = arith.constant 0 : index
    %14 = vector.load %arg3[%c0_4, %c0_5] : memref<128x128xbf16, #tpu.memory_space<vmem>>, vector<128x128xbf16>
    %cst = arith.constant dense<0.000000e+00> : vector<16x128xf32>
    %15 = tpu.matmul %12, %14, %cst {dimension_numbers = #tpu.dot_dimension_numbers<[1], [0], [0], [1], [0, 0, 1, 1], [], []>} : vector<16x128xbf16>, vector<128x128xbf16>, vector<16x128xf32> -> vector<16x128xf32>
    %16 = arith.addf %13, %15 : vector<16x128xf32>
    %c0_6 = arith.constant 0 : index
    %c0_7 = arith.constant 0 : index
    %17 = vector.load %arg4[%c0_6, %c0_7] : memref<16x128xf32, #tpu.memory_space<vmem>>, vector<16x128xf32>
    tpu.vector_store %arg4[%c0_6, %c0_7], %16 {strides = array<i32>} : memref<16x128xf32, #tpu.memory_space<vmem>>, vector<16x128xf32>,
    return
  }
  func.func @transform_0(%arg0: i32, %arg1: i32) -> (i32, i32) {
    %c0_i32 = arith.constant 0 : i32
    %c0_i32_0 = arith.constant 0 : i32
    return %c0_i32, %arg1 : i32, i32
  }
  func.func @transform_1(%arg0: i32, %arg1: i32) -> (i32, i32) {
    %c0_i32 = arith.constant 0 : i32
    %c0_i32_0 = arith.constant 0 : i32
    return %arg1, %c0_i32 : i32, i32
  }
  func.func @transform_2(%arg0: i32, %arg1: i32) -> (i32, i32) {
    %c0_i32 = arith.constant 0 : i32
    %c0_i32_0 = arith.constant 0 : i32
    return %arg0, %c0_i32 : i32, i32
  }
}

</mosaic_0001>

<bundles_post_ra>
// kernel: processor_forward.2
= control target key start
LH: loop header
LB: loop body
LE: loop exit
PB: predicated region body
PF: predicated region fallthrough
CT: control target
= control target key end

     0   :  { %v204_v0 = vmov 0.0   ;;  %vm205_vm0 = vmmov 0   ;;  %v19_v6 = vlaneseq  ;;  %v206_v13 = vmov 1.0|1.0   ;;  %s255_s1 = inlined_call_operand.vmem [shape: bf16[128,128], index: 1, kind: input, shape index: {}]   ;;  %s256_s0 = inlined_call_operand.vmem [shape: s32[1,128], index: 0, kind: input, shape index: {}]   ;;  %s257_s2 = inlined_call_operand.vmem [shape: f32[16,128], index: 2, kind: output, shape index: {}]  }
   0x1   :  { %173 = vmatprep.subr.bf16.mxu0 %v204_v0  ;;  %v196_v1 = vld [vmem:[%s255_s1] sm:$0xff]   ;;  %189 = vmatprep.mubr.msk.bf16.mxu0 %vm205_vm0, %v204_v0  ;;  %v197_v2 = vld [vmem:[%s255_s1 + $0x8] sm:$0xff]   ;;  %v198_v3 = vld [vmem:[%s255_s1 + $0x10] sm:$0xff]  }
   0x2   :  { %174 = vmatpush3.bf16.msra.mxu0 %v196_v1  ;;  %v199_v4 = vld [vmem:[%s255_s1 + $0x18] sm:$0xff]   ;;  %v200_v5 = vld [vmem:[%s255_s1 + $0x20] sm:$0xff]   ;;  %v201_v7 = vld [vmem:[%s255_s1 + $0x28] sm:$0xff]   ;;  %v20_v8 = vshrl.u32 %v19_v6, 7 }
   0x3   :  { %175 = vmatprep.subr.bf16.mxu0 %v204_v0  ;;  %v202_v9 = vld [vmem:[%s255_s1 + $0x30] sm:$0xff]   ;;  %v151_v11 = vld [vmem:[%s256_s0] ss:$0 sm:$0xff]  ;;  %v203_v12 = vld [vmem:[%s255_s1 + $0x38] sm:$0xff]  }
   0x4   :  { %v21_v10 = vadd.s32 8, %v20_v8  ;;  %vm29_vm1 = vcmp.eq.s32.totalorder %v20_v8, %v151_v11 }
   0x6   :  { %176 = vmatpush3.bf16.msra.mxu0 %v197_v2  ;;  %vm30_vm2 = vcmp.eq.s32.totalorder %v21_v10, %v151_v11 }
   0x7   :  { %177 = vmatprep.subr.bf16.mxu0 %v204_v0  ;;  %vm162_vm3 = vmpackc.low %vm30_vm2, %vm29_vm1 }
   0xa   :  { %178 = vmatpush3.bf16.msra.mxu0 %v198_v3 }
   0xb   :  { %179 = vmatprep.subr.bf16.mxu0 %v204_v0 }
   0xe   :  { %180 = vmatpush3.bf16.msra.mxu0 %v199_v4 }
   0xf   :  { %181 = vmatprep.subr.bf16.mxu0 %v204_v0 }
  0x12   :  { %182 = vmatpush3.bf16.msra.mxu0 %v200_v5 }
  0x13   :  { %183 = vmatprep.subr.bf16.mxu0 %v204_v0 }
  0x16   :  { %184 = vmatpush3.bf16.msra.mxu0 %v201_v7 }
  0x17   :  { %185 = vmatprep.subr.bf16.mxu0 %v204_v0 }
  0x1a   :  { %186 = vmatpush3.bf16.msra.mxu0 %v202_v9 }
  0x1b   :  { %187 = vmatprep.subr.bf16.mxu0 %v204_v0 }
  0x1e   :  { %188 = vmatpush3.bf16.msra.mxu0 %v203_v12 }
  0x21   :  { %190 = vmatmul.mubr.msk.bf16.vlgmr.msra.gmra.mrb[0].mxu0 %vm162_vm3, %v206_v13 }
  0xf4   :  { %v136_v14 = vpop.f32.mrb[0].mxu0 }
  0xf5   :  { %v191_v15 = vpop.f32.mrb[1].mxu0  ;;  %145 = vst [vmem:[%s257_s2] sm:$0xff] %v136_v14 }
  0xf6   :  { %v139_v16 = vpop.f32.mrb[2].mxu0 }
  0xf7   :  { %v192_v17 = vpop.f32.mrb[3].mxu0  ;;  %146 = vst [vmem:[%s257_s2 + $0x8] sm:$0xff] %v139_v16 }

// kernel: processor_forward.3
= control target key start
LH: loop header
LB: loop body
LE: loop exit
PB: predicated region body
PF: predicated region fallthrough
CT: control target
= control target key end

     0   :  { %v1054_v2 = vmov 0.0   ;;  %s1339_s0 = inlined_call_operand.vmem [shape: f32[16,256], index: 0, kind: input, shape index: {}]   ;;  %s1340_s1 = inlined_call_operand.vmem [shape: bf16[2,256,128], index: 1, kind: input, shape index: {}]   ;;  %s1341_s2 = inlined_call_operand.vmem [shape: f32[2,1,128], index: 2, kind: input, shape index: {}]   ;;  %s1342_s3 = inlined_call_operand.vmem [shape: bf16[2,128,128], index: 3, kind: input, shape index: {}]   ;;  %s1343_s4 = inlined_call_operand.vmem [shape: f32[2,1,128], index: 4, kind: input, shape index: {}]   ;;  %s1344_s5 = inlined_call_operand.vmem [shape: f32[2,1,128], index: 5, kind: input, shape index: {}]   ;;  %s1345_s6 = inlined_call_operand.vmem [shape: f32[2,1,128], index: 6, kind: input, shape index: {}]   ;;  %s1346_s7 = inlined_call_operand.hbm [shape: f32[16,128], index: 7, kind: output, shape index: {}]  }
   0x1   :  { %v974_v0 = vld [vmem:[%s1340_s1 + $0x40] sm:$0xff]   ;;  %929 = vmatprep.subr.bf16.mxu1 %v1054_v2  ;;  %v976_v3 = vld [vmem:[%s1340_s1 + $0x48] sm:$0xff]   ;;  %v978_v5 = vld [vmem:[%s1340_s1 + $0x50] sm:$0xff]  }
   0x2   :  { %v975_v1 = vld [vmem:[%s1340_s1] sm:$0xff]   ;;  %867 = vmatprep.subr.bf16.mxu0 %v974_v0  ;;  %v977_v4 = vld [vmem:[%s1340_s1 + $0x8] sm:$0xff]   ;;  %v979_v6 = vld [vmem:[%s1340_s1 + $0x10] sm:$0xff]  }
   0x3   :  { %868 = vmatpush3.bf16.msra.mxu0 %v975_v1  ;;  %v980_v7 = vld [vmem:[%s1340_s1 + $0x58] sm:$0xff]   ;;  %v982_v9 = vld [vmem:[%s1340_s1 + $0x60] sm:$0xff]   ;;  %v984_v11 = vld [vmem:[%s1340_s1 + $0x68] sm:$0xff]  }
   0x4   :  { %869 = vmatprep.subr.bf16.mxu0 %v976_v3  ;;  %v981_v8 = vld [vmem:[%s1340_s1 + $0x18] sm:$0xff]   ;;  %v983_v10 = vld [vmem:[%s1340_s1 + $0x20] sm:$0xff]   ;;  %v33_v12 = vld [vmem:[%s1339_s0 + $0x8] sm:$0xff] }
   0x5   :  { %v35_v13 = vld [vmem:[%s1339_s0 + $0x18] sm:$0xff]  ;;  %v985_v14 = vld [vmem:[%s1340_s1 + $0x28] sm:$0xff]   ;;  %v990_v16 = vld [vmem:[%s1342_s3] sm:$0xff]  }
   0x6   :  { %v45_v15 = vpack.c.bf16 %v35_v13, %v33_v12  ;;  %v986_v17 = vld [vmem:[%s1340_s1 + $0x70] sm:$0xff]   ;;  %930 = vmatpush3.bf16.msra.mxu1 %v990_v16  ;;  %v991_v18 = vld [vmem:[%s1342_s3 + $0x8] sm:$0xff]   ;;  %v988_v20 = vld [vmem:[%s1340_s1 + $0x78] sm:$0xff]  }
   0x7   :  { %870 = vmatpush3.bf16.msra.mxu0 %v977_v4  ;;  %v987_v19 = vld [vmem:[%s1340_s1 + $0x30] sm:$0xff]   ;;  %931 = vmatprep.subr.bf16.mxu1 %v1054_v2  ;;  %v989_v22 = vld [vmem:[%s1340_s1 + $0x38] sm:$0xff]   ;;  %v1167_v23 = vld [vmem:[%s1339_s0] sm:$0xff] }
   0x8   :  { %871 = vmatprep.subr.bf16.mxu0 %v978_v5  ;;  %213 = vmatprep.mubr.bf16.mxu0 %v45_v15  ;;  %v992_v21 = vld [vmem:[%s1342_s3 + $0x10] sm:$0xff]   ;;  %v993_v25 = vld [vmem:[%s1342_s3 + $0x18] sm:$0xff]   ;;  %v994_v27 = vld [vmem:[%s1342_s3 + $0x20] sm:$0xff]  }
   0x9   :  { %v1172_v24 = vld [vmem:[%s1339_s0 + $0x10] sm:$0xff] }
   0xa   :  { %932 = vmatpush3.bf16.msra.mxu1 %v991_v18  ;;  %v44_v26 = vpack.c.bf16 %v1172_v24, %v1167_v23 }
   0xb   :  { %872 = vmatpush3.bf16.msra.mxu0 %v979_v6  ;;  %933 = vmatprep.subr.bf16.mxu1 %v1054_v2 }
   0xc   :  { %873 = vmatprep.subr.bf16.mxu0 %v980_v7 }
   0xe   :  { %934 = vmatpush3.bf16.msra.mxu1 %v992_v21 }
   0xf   :  { %874 = vmatpush3.bf16.msra.mxu0 %v981_v8  ;;  %935 = vmatprep.subr.bf16.mxu1 %v1054_v2 }
  0x10   :  { %875 = vmatprep.subr.bf16.mxu0 %v982_v9 }
  0x12   :  { %936 = vmatpush3.bf16.msra.mxu1 %v993_v25 }
  0x13   :  { %876 = vmatpush3.bf16.msra.mxu0 %v983_v10  ;;  %937 = vmatprep.subr.bf16.mxu1 %v1054_v2 }
  0x14   :  { %877 = vmatprep.subr.bf16.mxu0 %v984_v11 }
  0x16   :  { %938 = vmatpush3.bf16.msra.mxu1 %v994_v27 }
  0x17   :  { %878 = vmatpush3.bf16.msra.mxu0 %v985_v14  ;;  %939 = vmatprep.subr.bf16.mxu1 %v1054_v2 }
  0x18   :  { %879 = vmatprep.subr.bf16.mxu0 %v986_v17 }
  0x1b   :  { %880 = vmatpush3.bf16.msra.mxu0 %v987_v19 }
  0x1c   :  { %881 = vmatprep.subr.bf16.mxu0 %v988_v20 }
  0x1f   :  { %882 = vmatpush3.bf16.msra.mxu0 %v989_v22 }
  0x22   :  { %214 = vmatmul.mubr.bf16.vlgmr.msra.gmra.mrb[0].mxu0 %v44_v26 }
  0x23   :  { %560 = vmatprep.mubr.bf16.mxu0 %v45_v15 }
  0x24   :  { %12 = vsyncpa [#allocation4], 0  ;;  %v995_v28 = vld [vmem:[%s1342_s3 + $0x28] sm:$0xff]   ;;  %v996_v29 = vld [vmem:[%s1342_s3 + $0x30] sm:$0xff]   ;;  %vm1055_vm0 = vmmov 0   ;;  %s1056_s22 = smov [#allocation3]  }
  0x25   :  { %940 = vmatpush3.bf16.msra.mxu1 %v995_v28  ;;  %v997_v30 = vld [vmem:[%s1342_s3 + $0x38] sm:$0xff]   ;;  %945 = vmatprep.mubr.msk.bf16.mxu1 %vm1055_vm0, %v1054_v2  ;;  %v759_v32 = vld [vmem:[%s1341_s2] ss:$0 sm:$0xff]  ;;  %v1000_v54 = vld [vmem:[%s1340_s1 + $0xc8] sm:$0xff]   ;;  %s748_s23 = sshll.u32 %s1056_s22, 4  ;;  %s749_s23 = int_to_ptr.vmem [resolvable:$true] %s748_s23 }
  0x26   :  { %941 = vmatprep.subr.bf16.mxu1 %v1054_v2  ;;  %v776_v43 = vld [vmem:[%s1343_s4] ss:$0 sm:$0xff]  ;;  %v1001_v55 = vld [vmem:[%s1340_s1 + $0x88] sm:$0xff]   ;;  %v1002_v56 = vld [vmem:[%s1340_s1 + $0xd0] sm:$0xff]   ;;  %p1035_p1 = scmp.lt.s32.totalorder %s749_s23, %s749_s23 }
  0x27   :  { %v998_v52 = vld [vmem:[%s1340_s1 + $0xc0] sm:$0xff]   ;;  %v1003_v57 = vld [vmem:[%s1340_s1 + $0x90] sm:$0xff]   ;;  %v1004_v58 = vld [vmem:[%s1340_s1 + $0xd8] sm:$0xff]  }
  0x28   :  { %v999_v53 = vld [vmem:[%s1340_s1 + $0x80] sm:$0xff]   ;;  %898 = vmatprep.subr.bf16.mxu0 %v998_v52  ;;  %v1005_v59 = vld [vmem:[%s1340_s1 + $0x98] sm:$0xff]   ;;  %v1008_v62 = vld [vmem:[%s1340_s1 + $0xe8] sm:$0xff]  }
  0x29   :  { %942 = vmatpush3.bf16.msra.mxu1 %v996_v29  ;;  %899 = vmatpush3.bf16.msra.mxu0 %v999_v53  ;;  %v1006_v60 = vld [vmem:[%s1340_s1 + $0xe0] sm:$0xff]   ;;  %v1009_v63 = vld [vmem:[%s1340_s1 + $0xa8] sm:$0xff]   ;;  %v1010_v0 = vld [vmem:[%s1340_s1 + $0xf0] sm:$0xff]  }
  0x2a   :  { %943 = vmatprep.subr.bf16.mxu1 %v1054_v2  ;;  %900 = vmatprep.subr.bf16.mxu0 %v1000_v54  ;;  %v1007_v61 = vld [vmem:[%s1340_s1 + $0xa0] sm:$0xff]   ;;  %v1011_v1 = vld [vmem:[%s1340_s1 + $0xb0] sm:$0xff]   ;;  %v1012_v3 = vld [vmem:[%s1340_s1 + $0xf8] sm:$0xff]  }
  0x2b   :  { %v1013_v4 = vld [vmem:[%s1340_s1 + $0xb8] sm:$0xff]   ;;  %v1014_v5 = vld [vmem:[%s1342_s3 + $0x40] sm:$0xff]   ;;  %v1015_v6 = vld [vmem:[%s1342_s3 + $0x48] sm:$0xff]  }
  0x2c   :  { %v1016_v7 = vld [vmem:[%s1342_s3 + $0x50] sm:$0xff]   ;;  %v1017_v8 = vld [vmem:[%s1342_s3 + $0x58] sm:$0xff]   ;;  %v1018_v9 = vld [vmem:[%s1342_s3 + $0x60] sm:$0xff]  }
  0x2d   :  { %944 = vmatpush3.bf16.msra.mxu1 %v997_v30  ;;  %901 = vmatpush3.bf16.msra.mxu0 %v1001_v55  ;;  %v785_v28 = vld [vmem:[%s1344_s5] ss:$0 sm:$0xff]  ;;  %v854_v53 = vld [vmem:[%s1343_s4 + $0x1] ss:$0 sm:$0xff] }
  0x2e   :  { %949 = vmatprep.subr.bf16.mxu1 %v1054_v2  ;;  %902 = vmatprep.subr.bf16.mxu0 %v1002_v56 }
  0x31   :  { %903 = vmatpush3.bf16.msra.mxu0 %v1003_v57 }
  0x32   :  { %904 = vmatprep.subr.bf16.mxu0 %v1004_v58 }
  0x35   :  { %905 = vmatpush3.bf16.msra.mxu0 %v1005_v59 }
  0x36   :  { %906 = vmatprep.subr.bf16.mxu0 %v1006_v60 }
  0x39   :  { %907 = vmatpush3.bf16.msra.mxu0 %v1007_v61 }
  0x3a   :  { %908 = vmatprep.subr.bf16.mxu0 %v1008_v62 }
  0x3d   :  { %909 = vmatpush3.bf16.msra.mxu0 %v1009_v63 }
  0x3e   :  { %910 = vmatprep.subr.bf16.mxu0 %v1010_v0 }
  0x41   :  { %911 = vmatpush3.bf16.msra.mxu0 %v1011_v1 }
  0x42   :  { %912 = vmatprep.subr.bf16.mxu0 %v1012_v3 }
  0x45   :  { %913 = vmatpush3.bf16.msra.mxu0 %v1013_v4 }
  0xf5   :  { %v883_v31 = vpop.f32.mrb[0].mxu0 }
  0xf6   :  { %v884_v33 = vpop.f32.mrb[1].mxu0 }
  0xf7   :  { %v885_v34 = vadd.f32 %v884_v33, %v883_v31  ;;  %v886_v35 = vpop.f32.mrb[2].mxu0  ;;  %v786_v33 = vld [vmem:[%s1345_s6] ss:$0 sm:$0xff] }
  0xf8   :  { %v887_v36 = vpop.f32.mrb[3].mxu0 }
  0xf9   :  { %v216_v37 = vadd.f32 %v885_v34, %v759_v32  ;;  %v888_v38 = vadd.f32 %v887_v36, %v886_v35 }
  0xfb   :  { %v219_v39 = vadd.f32 %v888_v38, %v759_v32  ;;  %v222_v40 = vmax.f32 %v216_v37, 0.0 }
  0xfd   :  { %v223_v41 = vmax.f32 %v219_v39, 0.0 }
  0xff   :  { %v224_v42 = vpack.c.bf16 %v223_v41, %v222_v40  ;;  %v1019_v41 = vld [vmem:[%s1342_s3 + $0x68] sm:$0xff]  }
 0x101   :  { %946 = vmatmul.mubr.bf16.vlgmr.msra.gmra.mrb[0].mxu1 %v224_v42  ;;  %v1020_v42 = vld [vmem:[%s1342_s3 + $0x70] sm:$0xff]  }
 0x102   :  { %965 = vmatprep.mubr.msk.bf16.mxu1 %vm1055_vm0, %v1054_v2  ;;  %950 = vmatpush3.bf16.msra.mxu1 %v1014_v5 }
 0x103   :  { %951 = vmatprep.subr.bf16.mxu1 %v1054_v2 }
 0x106   :  { %952 = vmatpush3.bf16.msra.mxu1 %v1015_v6 }
 0x107   :  { %953 = vmatprep.subr.bf16.mxu1 %v1054_v2 }
 0x10a   :  { %954 = vmatpush3.bf16.msra.mxu1 %v1016_v7 }
 0x10b   :  { %955 = vmatprep.subr.bf16.mxu1 %v1054_v2 }
 0x10e   :  { %956 = vmatpush3.bf16.msra.mxu1 %v1017_v8 }
 0x10f   :  { %957 = vmatprep.subr.bf16.mxu1 %v1054_v2 }
 0x112   :  { %958 = vmatpush3.bf16.msra.mxu1 %v1018_v9 }
 0x113   :  { %959 = vmatprep.subr.bf16.mxu1 %v1054_v2 }
 0x116   :  { %960 = vmatpush3.bf16.msra.mxu1 %v1019_v41 }
 0x117   :  { %961 = vmatprep.subr.bf16.mxu1 %v1054_v2 }
 0x11a   :  { %962 = vmatpush3.bf16.msra.mxu1 %v1020_v42 }
 0x11b   :  { %963 = vmatprep.subr.bf16.mxu1 %v1054_v2 }
 0x1d4   :  { %v330_v44 = vpop.f32.mrb[0].mxu1 }
 0x1d5   :  { %v1208_v45 = vadd.f32 %v776_v43, %v330_v44  ;;  %v947_v46 = vpop.f32.mrb[1].mxu1 }
 0x1d6   :  { %v333_v47 = vpop.f32.mrb[2].mxu1 }
 0x1d7   :  { %v1210_v48 = vadd.f32 %v776_v43, %v333_v47  ;;  %337 = vadd.xlane.f32.xlu0 %v1208_v45  ;;  %v948_v49 = vpop.f32.mrb[3].mxu1  ;;  %v341_v50 = vmul.f32 %v1208_v45, %v1208_v45  ;;  %v820_v43 = vld [vmem:[%s1341_s2 + $0x1] ss:$0 sm:$0xff] }
 0x1d9   :  { %343 = vadd.xlane.f32.xlu1 %v341_v50  ;;  %v342_v51 = vmul.f32 %v1210_v48, %v1210_v48 }
 0x1db   :  { %339 = vadd.xlane.f32.xlu0 %v1210_v48 }
 0x1dd   :  { %345 = vadd.xlane.f32.xlu1 %v342_v51 }
 0x264   :  { %v338_v10 = vpop.xlane.xlu0 %337 }
 0x265   :  { %v347_v11 = vmul.f32 0.0078125, %v338_v10 }
 0x266   :  { %v344_v12 = vpop.xlane.xlu1 %343 }
 0x267   :  { %v351_v13 = vmul.f32 %v347_v11, %v347_v11  ;;  %v349_v14 = vmul.f32 0.0078125, %v344_v12  ;;  %v355_v26 = vsub.f32 %v1208_v45, %v347_v11 }
 0x268   :  { %v340_v15 = vpop.xlane.xlu0 %339 }
 0x269   :  { %v353_v16 = vsub.f32 %v349_v14, %v351_v13  ;;  %v348_v17 = vmul.f32 0.0078125, %v340_v15  ;;  %v864_v15 = vld [vmem:[%s1344_s5 + $0x1] ss:$0 sm:$0xff]  ;;  %s1030_s5 = scalar_lea.vmem %s749_s23, 256 }
 0x26a   :  { %v346_v18 = vpop.xlane.xlu1 %345  ;;  %p1031_p0 = scmp.ne.s32.totalorder %s749_s23, %s1030_s5  ;;  %p1036_p2 = scmp.lt.s32.totalorder %s1030_s5, %s1030_s5 }
 0x26b   :  { %v357_v19 = vadd.f32 1e-05, %v353_v16  ;;  %v352_v20 = vmul.f32 %v348_v17, %v348_v17  ;;  %v350_v21 = vmul.f32 0.0078125, %v346_v18  ;;  %v356_v30 = vsub.f32 %v1210_v48, %v348_v17 }
 0x26c   :  { %p1037_p3 = por %p1036_p2, %p1035_p1 }
 0x26d   :  { %1022 = vrsqrt.f32 %v357_v19  ;;  %v354_v22 = vsub.f32 %v350_v21, %v352_v20  ;;  %v866_v19 = vld [vmem:[%s1345_s6 + $0x1] ss:$0 sm:$0xff] }
 0x26e   :  { %p1038_p4 = pnand %p1037_p3, %p1031_p0 }
 0x26f   :  { %v358_v25 = vadd.f32 1e-05, %v354_v22 }
 0x271   :  { %1024 = vrsqrt.f32 %v358_v25 }
 0x277   :  { %v1023_v27 = vpop.eup %1022 }
 0x278   :  { %v361_v29 = vmul.f32 %v1023_v27, %v355_v26 }
 0x27a   :  { %v370_v31 = vmul.f32 %v785_v28, %v361_v29 }
 0x27b   :  { %v1025_v32 = vpop.eup %1024 }
 0x27c   :  { %v362_v34 = vmul.f32 %v1025_v32, %v356_v30  ;;  %v379_v36 = vadd.f32 %v786_v33, %v370_v31 }
 0x27e   :  { %v371_v35 = vmul.f32 %v785_v28, %v362_v34  ;;  %v1295_v38 = vadd.f32 %v379_v36, %v1167_v23  ;;  %v1021_v23 = vld [vmem:[%s1342_s3 + $0x78] sm:$0xff]  }
 0x27f   :  { %964 = vmatpush3.bf16.msra.mxu1 %v1021_v23 }
 0x280   :  { %v380_v37 = vadd.f32 %v786_v33, %v371_v35 }
 0x282   :  { %v1298_v39 = vadd.f32 %v380_v37, %v1172_v24 }
 0x284   :  { %v389_v40 = vpack.c.bf16 %v1298_v39, %v1295_v38 }
 0x286   :  { %561 = vmatmul.mubr.bf16.vlgmr.msra.gmra.mrb[4].mxu0 %v389_v40 }
 0x359   :  { %v914_v24 = vpop.f32.mrb[4].mxu0 }
 0x35a   :  { %v915_v44 = vpop.f32.mrb[5].mxu0 }
 0x35b   :  { %v916_v45 = vadd.f32 %v915_v44, %v914_v24  ;;  %v917_v46 = vpop.f32.mrb[6].mxu0 }
 0x35c   :  { %v918_v47 = vpop.f32.mrb[7].mxu0 }
 0x35d   :  { %v563_v48 = vadd.f32 %v916_v45, %v820_v43  ;;  %v919_v49 = vadd.f32 %v918_v47, %v917_v46 }
 0x35f   :  { %v566_v50 = vadd.f32 %v919_v49, %v820_v43  ;;  %v569_v51 = vmax.f32 %v563_v48, 0.0 }
 0x361   :  { %v570_v52 = vmax.f32 %v566_v50, 0.0 }
 0x363   :  { %v571_v2 = vpack.c.bf16 %v570_v52, %v569_v51 }
 0x365   :  { %966 = vmatmul.mubr.bf16.vlgmr.msra.gmra.mrb[4].mxu1 %v571_v2 }
 0x438   :  { %v679_v54 = vpop.f32.mrb[4].mxu1 }
 0x439   :  { %v680_v55 = vadd.f32 %v854_v53, %v679_v54  ;;  %v967_v56 = vpop.f32.mrb[5].mxu1 }
 0x43a   :  { %v682_v57 = vpop.f32.mrb[6].mxu1 }
 0x43b   :  { %v683_v58 = vadd.f32 %v854_v53, %v682_v57  ;;  %686 = vadd.xlane.f32.xlu0 %v680_v55  ;;  %v968_v59 = vpop.f32.mrb[7].mxu1  ;;  %v690_v60 = vmul.f32 %v680_v55, %v680_v55 }
 0x43d   :  { %688 = vadd.xlane.f32.xlu1 %v683_v58  ;;  %v691_v61 = vmul.f32 %v683_v58, %v683_v58 }
 0x43f   :  { %692 = vadd.xlane.f32.xlu0 %v690_v60 }
 0x441   :  { %694 = vadd.xlane.f32.xlu1 %v691_v61 }
 0x4c8   :  { %v687_v62 = vpop.xlane.xlu0 %686 }
 0x4c9   :  { %v696_v63 = vmul.f32 0.0078125, %v687_v62 }
 0x4ca   :  { %v689_v0 = vpop.xlane.xlu1 %688 }
 0x4cb   :  { %v697_v1 = vmul.f32 0.0078125, %v689_v0  ;;  %v700_v4 = vmul.f32 %v696_v63, %v696_v63  ;;  %v704_v13 = vsub.f32 %v680_v55, %v696_v63 }
 0x4cc   :  { %v693_v3 = vpop.xlane.xlu0 %692 }
 0x4cd   :  { %v698_v5 = vmul.f32 0.0078125, %v693_v3  ;;  %v701_v7 = vmul.f32 %v697_v1, %v697_v1  ;;  %v705_v16 = vsub.f32 %v683_v58, %v697_v1 }
 0x4ce   :  { %v695_v6 = vpop.xlane.xlu1 %694 }
 0x4cf   :  { %v702_v8 = vsub.f32 %v698_v5, %v700_v4  ;;  %v699_v9 = vmul.f32 0.0078125, %v695_v6 }
 0x4d1   :  { %v706_v10 = vadd.f32 1e-05, %v702_v8  ;;  %v703_v11 = vsub.f32 %v699_v9, %v701_v7 }
 0x4d3   :  { %1026 = vrsqrt.f32 %v706_v10  ;;  %v707_v12 = vadd.f32 1e-05, %v703_v11 }
 0x4d5   :  { %1028 = vrsqrt.f32 %v707_v12 }
 0x4dd   :  { %v1027_v14 = vpop.eup %1026 }
 0x4de   :  { %v710_v17 = vmul.f32 %v1027_v14, %v704_v13 }
 0x4df   :  { %v1029_v18 = vpop.eup %1028 }
 0x4e0   :  { %v711_v20 = vmul.f32 %v1029_v18, %v705_v16  ;;  %v720_v21 = vmul.f32 %v864_v15, %v710_v17 }
 0x4e2   :  { %v721_v22 = vmul.f32 %v864_v15, %v711_v20  ;;  %v730_v25 = vadd.f32 %v866_v19, %v720_v21 }
 0x4e4   :  { %v731_v26 = vadd.f32 %v866_v19, %v721_v22  ;;  %v732_v27 = vadd.f32 %v730_v25, %v1295_v38 }
 0x4e6   :  { %v733_v28 = vadd.f32 %v731_v26, %v1298_v39  ;;  %741 = vst [vmem:[#allocation3] sm:$0xff] %v732_v27 }
 0x4e8   :  { %742 = vst [vmem:[#allocation3 + $0x8] sm:$0xff] %v733_v28 }
 0x4e9   :  { %1041 = shalt.err (!%p1038_p4)
}
 0x4ea   :  { %s1042_s25 = scalar_lea.hbm %s1346_s7, 256 }
 0x4eb   :  { %p1043_p5 = scmp.ne.s32.totalorder %s1346_s7, %s1042_s25  ;;  %p1046_p6 = scmp.lt.u32.totalorder %s1042_s25, %s1346_s7 }
 0x4ed   :  { %p1048_p7 = pnand %p1046_p6, %p1043_p5 }
 0x4ef   :  { %1051 = shalt.err (!%p1048_p7)
}
 0x4f0   :  { %s1057_s28 = smov 128   ;;  %s1058_s29 = smov 8  }
 0x4f1   :  { %754 = dma.vmem_to_hbm [thread:$0]  %s749_s23, 256, %s1346_s7, [#allocation4], %s1057_s28, %s1057_s28, %s1058_s29  }
 0x4f2   :  { %1052 = dma.done.wait [#allocation4], 256  }
 0x4f3   :  { %1053 = vsyncadd [#allocation4], 4294967040 }
 0x4f4   :  { %758 = vsyncpa [#allocation4], 1 }

</bundles_post_ra>
